<compile_context>
chip_gen: v7x
topology: tpu7x:2x2x1
jax: 0.10.0
libtpu: 0.0.40
codegen_flags: <defaults>
</compile_context>

<pallas_src>
import functools

import jax
import jax.numpy as jnp
from jax import lax
from jax.experimental import pallas as pl
from jax.experimental.pallas import tpu as pltpu

STEP_TYPE_LAST = 2  # alf.data_structures.StepType.LAST


def _taac_td_loss_kernel(step_ref, rb_ref, tb_ref, reward_ref, discount_ref,
                         value_ref, tgt_ref, loss_ref, *, gamma, T):
    """All refs are [T, TILE_B] blocks in VMEM; recurrence unrolled over T."""
    btile = reward_ref.shape[1]

    # ---- full-tile (wide VPU) precomputation, done once per block ----------
    # int8 inputs are widened in-register (cheap unpack) before comparing.
    step = step_ref[...].astype(jnp.int32)          # [T, Bt]
    rb = rb_ref[...].astype(jnp.int32)
    tb = tb_ref[...].astype(jnp.int32)
    rew = reward_ref[...]                           # [T, Bt] f32
    disc = discount_ref[...] * gamma                # [T, Bt] f32
    val = value_ref[...]
    tgt = tgt_ref[...]

    row = lax.broadcasted_iota(jnp.int32, (T, btile), 0)
    b = ((rb != 0) | (tb != 0)) & (row > 0)         # b[0, :] forced False
    is_lasts = ((step == STEP_TYPE_LAST) | b).astype(jnp.float32)

    # ---- backward recurrence (serial in T; T is small & static) ------------
    loss_rows = [None] * T
    # tensor_extend_zero: appended last loss row is zero.
    loss_rows[T - 1] = jnp.zeros((1, btile), jnp.float32)

    acc = tgt[T - 1:T, :]                           # rets[T-1] = target_value[T-1]
    for t in range(T - 2, -1, -1):
        ret_t = acc * disc[t + 1:t + 2, :] + rew[t + 1:t + 2, :]
        il = is_lasts[t:t + 1, :]
        acc = il * tgt[t:t + 1, :] + (1.0 - il) * ret_t
        td = ret_t - val[t:t + 1, :]
        loss_rows[t] = td * td                      # element_wise_squared_loss

    # single full-tile, lane/sublane-dense store
    loss_ref[...] = jnp.concatenate(loss_rows, axis=0)


def _ceil_to(x, m):
    return ((x + m - 1) // m) * m


def taac_td_loss(step_type, rollout_b, train_b, reward, discount, value,
                 target_value, gamma=0.99, tile_b_max=2048):
    """Pallas wrapper. All inputs are [T, B]; returns loss of shape [T, B]."""
    T, B = reward.shape
    assert T >= 2, "sequence length must be at least 2"

    # Lane-align the batch dim and pick a wide batch tile.
    bp = _ceil_to(B, 128)
    tile_b = min(bp, tile_b_max)
    bp = _ceil_to(bp, tile_b)
    pad = bp - B

    def prep(x, dtype):
        x = x.astype(dtype)
        if pad:
            x = jnp.pad(x, ((0, 0), (0, pad)))
        return x

    args = (
        prep(step_type, jnp.int8),
        prep(rollout_b, jnp.int8),
        prep(train_b, jnp.int8),
        prep(reward, jnp.float32),
        prep(discount, jnp.float32),
        prep(value, jnp.float32),
        prep(target_value, jnp.float32),
    )

    kernel = functools.partial(_taac_td_loss_kernel, gamma=float(gamma), T=T)
    spec = pl.BlockSpec((T, tile_b), lambda j: (0, j))

    out = pl.pallas_call(
        kernel,
        out_shape=jax.ShapeDtypeStruct((T, bp), jnp.float32),
        grid=(bp // tile_b,),
        in_specs=[spec] * 7,
        out_specs=spec,
        compiler_params=pltpu.CompilerParams(
            dimension_semantics=("parallel",)),
    )(*args)
    return out[:, :B]


def _reference(step_type, rollout_b, train_b, reward, discount, value,
               target_value, gamma=0.99):
    """Pure-jnp reference mirroring the PyTorch forward (for validation)."""
    T, B = reward.shape
    discounts = discount.astype(jnp.float32) * gamma
    b = (rollout_b.astype(bool) | train_b.astype(bool))
    b = b.at[0, :].set(False)
    is_lasts = ((step_type == STEP_TYPE_LAST) | b).astype(jnp.float32)

    rets = jnp.zeros_like(target_value)
    rets = rets.at[T - 1].set(target_value[T - 1])
    acc = rets
    for t in range(T - 2, -1, -1):
        r_t = acc[t + 1] * discounts[t + 1] + reward[t + 1]
        rets = rets.at[t].set(r_t)
        acc = acc.at[t].set(is_lasts[t] * target_value[t] +
                            (1 - is_lasts[t]) * r_t)
    returns = rets[:-1]
    loss = (returns - value[:-1]) ** 2
    return jnp.concatenate([loss, jnp.zeros((1, B), loss.dtype)], axis=0)


def _make_inputs(key, T, B):
    k = jax.random.split(key, 7)
    step_type = jax.random.randint(k[0], (T, B), 0, 3, dtype=jnp.int32)
    rollout_b = jax.random.bernoulli(k[1], 0.3, (T, B)).astype(jnp.int32)
    train_b = jax.random.bernoulli(k[2], 0.3, (T, B)).astype(jnp.int32)
    reward = jax.random.normal(k[3], (T, B), dtype=jnp.float32)
    discount = jax.random.bernoulli(k[4], 0.9, (T, B)).astype(jnp.float32)
    value = jax.random.normal(k[5], (T, B), dtype=jnp.float32)
    target_value = jax.random.normal(k[6], (T, B), dtype=jnp.float32)
    return step_type, rollout_b, train_b, reward, discount, value, target_value


if __name__ == "__main__":
    gamma = 0.99  # deterministic "parameter" from __init__
    key = jax.random.PRNGKey(0)
    k1, k2 = jax.random.split(key)

    # Case 1: single-block path (T=8, B=128).
    T, B = 8, 128
    ins = _make_inputs(k1, T, B)
    loss = jax.block_until_ready(taac_td_loss(*ins, gamma=gamma))
    ref = _reference(*ins, gamma=gamma)
    assert loss.shape == (T, B)
    assert jnp.allclose(loss, ref, atol=1e-5, rtol=1e-5), "mismatch vs reference (case 1)"

    # Case 2: multi-block grid + batch padding path (B not a tile multiple).
    T2, B2 = 8, 200
    ins2 = _make_inputs(k2, T2, B2)
    loss2 = jax.block_until_ready(taac_td_loss(*ins2, gamma=gamma, tile_b_max=128))
    ref2 = _reference(*ins2, gamma=gamma)
    assert loss2.shape == (T2, B2)
    assert jnp.allclose(loss2, ref2, atol=1e-5, rtol=1e-5), "mismatch vs reference (case 2)"

    # TODO(synk): multi-dim reward case (info.reward.ndim == 3) with per-dim
    # gamma and the trailing loss.mean(dim=-1) is not implemented here.
    print("KERNEL_OK")
</pallas_src>

<mosaic_0001>
module attributes {stable_mosaic.version = 11 : i64} {
  func.func @_taac_td_loss_kernel(%arg0: i32, %arg1: memref<8x128xi8, #tpu.memory_space<vmem>>, %arg2: memref<8x128xi8, #tpu.memory_space<vmem>>, %arg3: memref<8x128xi8, #tpu.memory_space<vmem>>, %arg4: memref<8x128xf32, #tpu.memory_space<vmem>>, %arg5: memref<8x128xf32, #tpu.memory_space<vmem>>, %arg6: memref<8x128xf32, #tpu.memory_space<vmem>>, %arg7: memref<8x128xf32, #tpu.memory_space<vmem>>, %arg8: memref<8x128xf32, #tpu.memory_space<vmem>>) attributes {dimension_semantics = [#tpu.dimension_semantics<parallel>], iteration_bounds = array<i64: 1>, scalar_prefetch = 0 : i64, scratch_operands = 0 : i64, tpu.core_type = #tpu.core_type<tc>, window_params = [{transform_indices = @transform_0, window_bounds = array<i64: 8, 128>}, {transform_indices = @transform_1, window_bounds = array<i64: 8, 128>}, {transform_indices = @transform_2, window_bounds = array<i64: 8, 128>}, {transform_indices = @transform_3, window_bounds = array<i64: 8, 128>}, {transform_indices = @transform_4, window_bounds = array<i64: 8, 128>}, {transform_indices = @transform_5, window_bounds = array<i64: 8, 128>}, {transform_indices = @transform_6, window_bounds = array<i64: 8, 128>}, {transform_indices = @transform_7, window_bounds = array<i64: 8, 128>}]} {
    %c0 = arith.constant 0 : index
    %c0_0 = arith.constant 0 : index
    %0 = vector.load %arg1[%c0, %c0_0] : memref<8x128xi8, #tpu.memory_space<vmem>>, vector<8x128xi8>
    %1 = arith.extsi %0 : vector<8x128xi8> to vector<8x128xi32>
    %c0_1 = arith.constant 0 : index
    %c0_2 = arith.constant 0 : index
    %2 = vector.load %arg2[%c0_1, %c0_2] : memref<8x128xi8, #tpu.memory_space<vmem>>, vector<8x128xi8>
    %3 = arith.extsi %2 : vector<8x128xi8> to vector<8x128xi32>
    %c0_3 = arith.constant 0 : index
    %c0_4 = arith.constant 0 : index
    %4 = vector.load %arg3[%c0_3, %c0_4] : memref<8x128xi8, #tpu.memory_space<vmem>>, vector<8x128xi8>
    %5 = arith.extsi %4 : vector<8x128xi8> to vector<8x128xi32>
    %c0_5 = arith.constant 0 : index
    %c0_6 = arith.constant 0 : index
    %6 = vector.load %arg4[%c0_5, %c0_6] : memref<8x128xf32, #tpu.memory_space<vmem>>, vector<8x128xf32>
    %c0_7 = arith.constant 0 : index
    %c0_8 = arith.constant 0 : index
    %7 = vector.load %arg5[%c0_7, %c0_8] : memref<8x128xf32, #tpu.memory_space<vmem>>, vector<8x128xf32>
    %cst = arith.constant 9.900000e-01 : f32
    %8 = vector.broadcast %cst : f32 to vector<8x128xf32>
    %9 = arith.mulf %7, %8 : vector<8x128xf32>
    %c0_9 = arith.constant 0 : index
    %c0_10 = arith.constant 0 : index
    %10 = vector.load %arg6[%c0_9, %c0_10] : memref<8x128xf32, #tpu.memory_space<vmem>>, vector<8x128xf32>
    %c0_11 = arith.constant 0 : index
    %c0_12 = arith.constant 0 : index
    %11 = vector.load %arg7[%c0_11, %c0_12] : memref<8x128xf32, #tpu.memory_space<vmem>>, vector<8x128xf32>
    %12 = tpu.iota {dimensions = array<i32: 0>} : vector<8x128xi32>
    %c0_i32 = arith.constant 0 : i32
    %13 = vector.broadcast %c0_i32 : i32 to vector<8x128xi32>
    %14 = arith.cmpi ne, %3, %13 : vector<8x128xi32>
    %c0_i32_13 = arith.constant 0 : i32
    %15 = vector.broadcast %c0_i32_13 : i32 to vector<8x128xi32>
    %16 = arith.cmpi ne, %5, %15 : vector<8x128xi32>
    %17 = arith.ori %14, %16 : vector<8x128xi1>
    %c0_i32_14 = arith.constant 0 : i32
    %18 = vector.broadcast %c0_i32_14 : i32 to vector<8x128xi32>
    %19 = arith.cmpi sgt, %12, %18 : vector<8x128xi32>
    %20 = arith.andi %17, %19 : vector<8x128xi1>
    %c2_i32 = arith.constant 2 : i32
    %21 = vector.broadcast %c2_i32 : i32 to vector<8x128xi32>
    %22 = arith.cmpi eq, %1, %21 : vector<8x128xi32>
    %23 = arith.ori %22, %20 : vector<8x128xi1>
    %24 = arith.extui %23 : vector<8x128xi1> to vector<8x128xi32>
    %25 = arith.sitofp %24 : vector<8x128xi32> to vector<8x128xf32>
    %cst_15 = arith.constant 0.000000e+00 : f32
    %26 = vector.broadcast %cst_15 : f32 to vector<1x128xf32>
    %27 = vector.extract_strided_slice %11 {offsets = [7, 0], sizes = [1, 128], strides = [1, 1]} : vector<8x128xf32> to vector<1x128xf32>
    %28 = vector.extract_strided_slice %9 {offsets = [7, 0], sizes = [1, 128], strides = [1, 1]} : vector<8x128xf32> to vector<1x128xf32>
    %29 = arith.mulf %27, %28 : vector<1x128xf32>
    %30 = vector.extract_strided_slice %6 {offsets = [7, 0], sizes = [1, 128], strides = [1, 1]} : vector<8x128xf32> to vector<1x128xf32>
    %31 = arith.addf %29, %30 : vector<1x128xf32>
    %32 = vector.extract_strided_slice %25 {offsets = [6, 0], sizes = [1, 128], strides = [1, 1]} : vector<8x128xf32> to vector<1x128xf32>
    %33 = vector.extract_strided_slice %11 {offsets = [6, 0], sizes = [1, 128], strides = [1, 1]} : vector<8x128xf32> to vector<1x128xf32>
    %34 = arith.mulf %32, %33 : vector<1x128xf32>
    %cst_16 = arith.constant 1.000000e+00 : f32
    %35 = vector.broadcast %cst_16 : f32 to vector<1x128xf32>
    %36 = arith.subf %35, %32 : vector<1x128xf32>
    %37 = arith.mulf %36, %31 : vector<1x128xf32>
    %38 = arith.addf %34, %37 : vector<1x128xf32>
    %39 = vector.extract_strided_slice %10 {offsets = [6, 0], sizes = [1, 128], strides = [1, 1]} : vector<8x128xf32> to vector<1x128xf32>
    %40 = arith.subf %31, %39 : vector<1x128xf32>
    %41 = arith.mulf %40, %40 : vector<1x128xf32>
    %42 = vector.extract_strided_slice %9 {offsets = [6, 0], sizes = [1, 128], strides = [1, 1]} : vector<8x128xf32> to vector<1x128xf32>
    %43 = arith.mulf %38, %42 : vector<1x128xf32>
    %44 = vector.extract_strided_slice %6 {offsets = [6, 0], sizes = [1, 128], strides = [1, 1]} : vector<8x128xf32> to vector<1x128xf32>
    %45 = arith.addf %43, %44 : vector<1x128xf32>
    %46 = vector.extract_strided_slice %25 {offsets = [5, 0], sizes = [1, 128], strides = [1, 1]} : vector<8x128xf32> to vector<1x128xf32>
    %47 = vector.extract_strided_slice %11 {offsets = [5, 0], sizes = [1, 128], strides = [1, 1]} : vector<8x128xf32> to vector<1x128xf32>
    %48 = arith.mulf %46, %47 : vector<1x128xf32>
    %cst_17 = arith.constant 1.000000e+00 : f32
    %49 = vector.broadcast %cst_17 : f32 to vector<1x128xf32>
    %50 = arith.subf %49, %46 : vector<1x128xf32>
    %51 = arith.mulf %50, %45 : vector<1x128xf32>
    %52 = arith.addf %48, %51 : vector<1x128xf32>
    %53 = vector.extract_strided_slice %10 {offsets = [5, 0], sizes = [1, 128], strides = [1, 1]} : vector<8x128xf32> to vector<1x128xf32>
    %54 = arith.subf %45, %53 : vector<1x128xf32>
    %55 = arith.mulf %54, %54 : vector<1x128xf32>
    %56 = vector.extract_strided_slice %9 {offsets = [5, 0], sizes = [1, 128], strides = [1, 1]} : vector<8x128xf32> to vector<1x128xf32>
    %57 = arith.mulf %52, %56 : vector<1x128xf32>
    %58 = vector.extract_strided_slice %6 {offsets = [5, 0], sizes = [1, 128], strides = [1, 1]} : vector<8x128xf32> to vector<1x128xf32>
    %59 = arith.addf %57, %58 : vector<1x128xf32>
    %60 = vector.extract_strided_slice %25 {offsets = [4, 0], sizes = [1, 128], strides = [1, 1]} : vector<8x128xf32> to vector<1x128xf32>
    %61 = vector.extract_strided_slice %11 {offsets = [4, 0], sizes = [1, 128], strides = [1, 1]} : vector<8x128xf32> to vector<1x128xf32>
    %62 = arith.mulf %60, %61 : vector<1x128xf32>
    %cst_18 = arith.constant 1.000000e+00 : f32
    %63 = vector.broadcast %cst_18 : f32 to vector<1x128xf32>
    %64 = arith.subf %63, %60 : vector<1x128xf32>
    %65 = arith.mulf %64, %59 : vector<1x128xf32>
    %66 = arith.addf %62, %65 : vector<1x128xf32>
    %67 = vector.extract_strided_slice %10 {offsets = [4, 0], sizes = [1, 128], strides = [1, 1]} : vector<8x128xf32> to vector<1x128xf32>
    %68 = arith.subf %59, %67 : vector<1x128xf32>
    %69 = arith.mulf %68, %68 : vector<1x128xf32>
    %70 = vector.extract_strided_slice %9 {offsets = [4, 0], sizes = [1, 128], strides = [1, 1]} : vector<8x128xf32> to vector<1x128xf32>
    %71 = arith.mulf %66, %70 : vector<1x128xf32>
    %72 = vector.extract_strided_slice %6 {offsets = [4, 0], sizes = [1, 128], strides = [1, 1]} : vector<8x128xf32> to vector<1x128xf32>
    %73 = arith.addf %71, %72 : vector<1x128xf32>
    %74 = vector.extract_strided_slice %25 {offsets = [3, 0], sizes = [1, 128], strides = [1, 1]} : vector<8x128xf32> to vector<1x128xf32>
    %75 = vector.extract_strided_slice %11 {offsets = [3, 0], sizes = [1, 128], strides = [1, 1]} : vector<8x128xf32> to vector<1x128xf32>
    %76 = arith.mulf %74, %75 : vector<1x128xf32>
    %cst_19 = arith.constant 1.000000e+00 : f32
    %77 = vector.broadcast %cst_19 : f32 to vector<1x128xf32>
    %78 = arith.subf %77, %74 : vector<1x128xf32>
    %79 = arith.mulf %78, %73 : vector<1x128xf32>
    %80 = arith.addf %76, %79 : vector<1x128xf32>
    %81 = vector.extract_strided_slice %10 {offsets = [3, 0], sizes = [1, 128], strides = [1, 1]} : vector<8x128xf32> to vector<1x128xf32>
    %82 = arith.subf %73, %81 : vector<1x128xf32>
    %83 = arith.mulf %82, %82 : vector<1x128xf32>
    %84 = vector.extract_strided_slice %9 {offsets = [3, 0], sizes = [1, 128], strides = [1, 1]} : vector<8x128xf32> to vector<1x128xf32>
    %85 = arith.mulf %80, %84 : vector<1x128xf32>
    %86 = vector.extract_strided_slice %6 {offsets = [3, 0], sizes = [1, 128], strides = [1, 1]} : vector<8x128xf32> to vector<1x128xf32>
    %87 = arith.addf %85, %86 : vector<1x128xf32>
    %88 = vector.extract_strided_slice %25 {offsets = [2, 0], sizes = [1, 128], strides = [1, 1]} : vector<8x128xf32> to vector<1x128xf32>
    %89 = vector.extract_strided_slice %11 {offsets = [2, 0], sizes = [1, 128], strides = [1, 1]} : vector<8x128xf32> to vector<1x128xf32>
    %90 = arith.mulf %88, %89 : vector<1x128xf32>
    %cst_20 = arith.constant 1.000000e+00 : f32
    %91 = vector.broadcast %cst_20 : f32 to vector<1x128xf32>
    %92 = arith.subf %91, %88 : vector<1x128xf32>
    %93 = arith.mulf %92, %87 : vector<1x128xf32>
    %94 = arith.addf %90, %93 : vector<1x128xf32>
    %95 = vector.extract_strided_slice %10 {offsets = [2, 0], sizes = [1, 128], strides = [1, 1]} : vector<8x128xf32> to vector<1x128xf32>
    %96 = arith.subf %87, %95 : vector<1x128xf32>
    %97 = arith.mulf %96, %96 : vector<1x128xf32>
    %98 = vector.extract_strided_slice %9 {offsets = [2, 0], sizes = [1, 128], strides = [1, 1]} : vector<8x128xf32> to vector<1x128xf32>
    %99 = arith.mulf %94, %98 : vector<1x128xf32>
    %100 = vector.extract_strided_slice %6 {offsets = [2, 0], sizes = [1, 128], strides = [1, 1]} : vector<8x128xf32> to vector<1x128xf32>
    %101 = arith.addf %99, %100 : vector<1x128xf32>
    %102 = vector.extract_strided_slice %25 {offsets = [1, 0], sizes = [1, 128], strides = [1, 1]} : vector<8x128xf32> to vector<1x128xf32>
    %103 = vector.extract_strided_slice %11 {offsets = [1, 0], sizes = [1, 128], strides = [1, 1]} : vector<8x128xf32> to vector<1x128xf32>
    %104 = arith.mulf %102, %103 : vector<1x128xf32>
    %cst_21 = arith.constant 1.000000e+00 : f32
    %105 = vector.broadcast %cst_21 : f32 to vector<1x128xf32>
    %106 = arith.subf %105, %102 : vector<1x128xf32>
    %107 = arith.mulf %106, %101 : vector<1x128xf32>
    %108 = arith.addf %104, %107 : vector<1x128xf32>
    %109 = vector.extract_strided_slice %10 {offsets = [1, 0], sizes = [1, 128], strides = [1, 1]} : vector<8x128xf32> to vector<1x128xf32>
    %110 = arith.subf %101, %109 : vector<1x128xf32>
    %111 = arith.mulf %110, %110 : vector<1x128xf32>
    %112 = vector.extract_strided_slice %9 {offsets = [1, 0], sizes = [1, 128], strides = [1, 1]} : vector<8x128xf32> to vector<1x128xf32>
    %113 = arith.mulf %108, %112 : vector<1x128xf32>
    %114 = vector.extract_strided_slice %6 {offsets = [1, 0], sizes = [1, 128], strides = [1, 1]} : vector<8x128xf32> to vector<1x128xf32>
    %115 = arith.addf %113, %114 : vector<1x128xf32>
    %116 = vector.extract_strided_slice %10 {offsets = [0, 0], sizes = [1, 128], strides = [1, 1]} : vector<8x128xf32> to vector<1x128xf32>
    %117 = arith.subf %115, %116 : vector<1x128xf32>
    %118 = arith.mulf %117, %117 : vector<1x128xf32>
    %119 = tpu.concatenate %118, %111, %97, %83, %69, %55, %41, %26 in 0 : vector<1x128xf32>, vector<1x128xf32>, vector<1x128xf32>, vector<1x128xf32>, vector<1x128xf32>, vector<1x128xf32>, vector<1x128xf32>, vector<1x128xf32> -> vector<8x128xf32>
    %c0_22 = arith.constant 0 : index
    %c0_23 = arith.constant 0 : index
    %120 = vector.load %arg8[%c0_22, %c0_23] : memref<8x128xf32, #tpu.memory_space<vmem>>, vector<8x128xf32>
    tpu.vector_store %arg8[%c0_22, %c0_23], %119 {strides = array<i32>} : memref<8x128xf32, #tpu.memory_space<vmem>>, vector<8x128xf32>,
    return
  }
  func.func @transform_0(%arg0: i32) -> (i32, i32) {
    %c0_i32 = arith.constant 0 : i32
    %c0_i32_0 = arith.constant 0 : i32
    return %c0_i32, %arg0 : i32, i32
  }
  func.func @transform_1(%arg0: i32) -> (i32, i32) {
    %c0_i32 = arith.constant 0 : i32
    %c0_i32_0 = arith.constant 0 : i32
    return %c0_i32, %arg0 : i32, i32
  }
  func.func @transform_2(%arg0: i32) -> (i32, i32) {
    %c0_i32 = arith.constant 0 : i32
    %c0_i32_0 = arith.constant 0 : i32
    return %c0_i32, %arg0 : i32, i32
  }
  func.func @transform_3(%arg0: i32) -> (i32, i32) {
    %c0_i32 = arith.constant 0 : i32
    %c0_i32_0 = arith.constant 0 : i32
    return %c0_i32, %arg0 : i32, i32
  }
  func.func @transform_4(%arg0: i32) -> (i32, i32) {
    %c0_i32 = arith.constant 0 : i32
    %c0_i32_0 = arith.constant 0 : i32
    return %c0_i32, %arg0 : i32, i32
  }
  func.func @transform_5(%arg0: i32) -> (i32, i32) {
    %c0_i32 = arith.constant 0 : i32
    %c0_i32_0 = arith.constant 0 : i32
    return %c0_i32, %arg0 : i32, i32
  }
  func.func @transform_6(%arg0: i32) -> (i32, i32) {
    %c0_i32 = arith.constant 0 : i32
    %c0_i32_0 = arith.constant 0 : i32
    return %c0_i32, %arg0 : i32, i32
  }
  func.func @transform_7(%arg0: i32) -> (i32, i32) {
    %c0_i32 = arith.constant 0 : i32
    %c0_i32_0 = arith.constant 0 : i32
    return %c0_i32, %arg0 : i32, i32
  }
}

</mosaic_0001>

<bundles_post_ra>
// kernel: tpu_custom_call.1
= control target key start
LH: loop header
LB: loop body
LE: loop exit
PB: predicated region body
PF: predicated region fallthrough
CT: control target
= control target key end

     0   :  { %12 = vsyncpa [#allocation3], 0  ;;  %s452_s0 = inlined_call_operand.hbm [shape: s8[8,128], index: 0, kind: input, shape index: {}]   ;;  %s453_s1 = inlined_call_operand.vmem [shape: s8[8,128], index: 1, kind: input, shape index: {}]   ;;  %s454_s2 = inlined_call_operand.hbm [shape: s8[8,128], index: 2, kind: input, shape index: {}]   ;;  %s455_s3 = inlined_call_operand.vmem [shape: f32[8,128], index: 3, kind: input, shape index: {}]   ;;  %s456_s4 = inlined_call_operand.hbm [shape: f32[8,128], index: 4, kind: input, shape index: {}]   ;;  %s457_s5 = inlined_call_operand.vmem [shape: f32[8,128], index: 5, kind: input, shape index: {}]   ;;  %s458_s6 = inlined_call_operand.hbm [shape: f32[8,128], index: 6, kind: input, shape index: {}]   ;;  %s459_s7 = inlined_call_operand.hbm [shape: f32[8,128], index: 7, kind: output, shape index: {}]  }
   0x1   :  { %13 = vsyncpa [#allocation6], 0 }
   0x2   :  { %14 = vsyncpa [#allocation9], 0 }
   0x3   :  { %15 = vsyncpa [#allocation4], 0  ;;  %s337_s24 = smov [#allocation5]   ;;  %s338_s26 = smov [#allocation2]  }
   0x4   :  { %s34_s25 = sshll.u32 %s337_s24, 4  ;;  %s22_s27 = sshll.u32 %s338_s26, 4  ;;  %s35_s25 = int_to_ptr.vmem [resolvable:$true] %s34_s25  ;;  %s23_s27 = int_to_ptr.vmem [resolvable:$true] %s22_s27 }
   0x5   :  { %s219_s30 = scalar_lea.hbm %s454_s2, 32 }
   0x6   :  { %p220_p0 = scmp.ne.s32.totalorder %s454_s2, %s219_s30  ;;  %p223_p1 = scmp.lt.u32.totalorder %s219_s30, %s454_s2 }
   0x8   :  { %p225_p2 = pnand %p223_p1, %p220_p0 }
   0xa   :  { %228 = shalt.err (!%p225_p2)
}
   0xb   :  { %s229_s12 = scalar_lea.vmem %s35_s25, 32  ;;  %p234_p4 = scmp.lt.s32.totalorder %s35_s25, %s35_s25 }
   0xc   :  { %p230_p3 = scmp.ne.s32.totalorder %s35_s25, %s229_s12  ;;  %p235_p5 = scmp.lt.s32.totalorder %s229_s12, %s229_s12 }
   0xe   :  { %p236_p6 = por %p235_p5, %p234_p4 }
  0x10   :  { %p237_p7 = pnand %p236_p6, %p230_p3 }
  0x12   :  { %240 = shalt.err (!%p237_p7)
}
  0x13   :  { %37 = dma.hbm_to_vmem [thread:$0]  %s454_s2, 32, %s35_s25, [#allocation6]  }
  0x14   :  { %s241_s17 = scalar_lea.hbm %s452_s0, 32 }
  0x15   :  { %p242_p8 = scmp.ne.s32.totalorder %s452_s0, %s241_s17  ;;  %p245_p9 = scmp.lt.u32.totalorder %s241_s17, %s452_s0 }
  0x17   :  { %p247_p10 = pnand %p245_p9, %p242_p8 }
  0x19   :  { %250 = shalt.err (!%p247_p10)
}
  0x1a   :  { %s251_s22 = scalar_lea.vmem %s23_s27, 32  ;;  %p256_p12 = scmp.lt.s32.totalorder %s23_s27, %s23_s27 }
  0x1b   :  { %p252_p11 = scmp.ne.s32.totalorder %s23_s27, %s251_s22  ;;  %p257_p13 = scmp.lt.s32.totalorder %s251_s22, %s251_s22 }
  0x1d   :  { %p258_p0 = por %p257_p13, %p256_p12 }
  0x1f   :  { %p259_p1 = pnand %p258_p0, %p252_p11 }
  0x21   :  { %262 = shalt.err (!%p259_p1)
}
  0x22   :  { %25 = dma.hbm_to_vmem [thread:$0]  %s452_s0, 32, %s23_s27, [#allocation3]  }
  0x23   :  { %s339_s24 = smov [#allocation7]   ;;  %s340_s26 = smov [#allocation8]  }
  0x24   :  { %s46_s25 = sshll.u32 %s339_s24, 4  ;;  %s58_s28 = sshll.u32 %s340_s26, 4  ;;  %s47_s25 = int_to_ptr.vmem [resolvable:$true] %s46_s25  ;;  %s59_s28 = int_to_ptr.vmem [resolvable:$true] %s58_s28 }
  0x25   :  { %s263_s8 = scalar_lea.hbm %s456_s4, 128 }
  0x26   :  { %p264_p2 = scmp.ne.s32.totalorder %s456_s4, %s263_s8  ;;  %p267_p3 = scmp.lt.u32.totalorder %s263_s8, %s456_s4 }
  0x28   :  { %p269_p4 = pnand %p267_p3, %p264_p2 }
  0x2a   :  { %272 = shalt.err (!%p269_p4)
}
  0x2b   :  { %s273_s0 = scalar_lea.vmem %s47_s25, 128  ;;  %p278_p6 = scmp.lt.s32.totalorder %s47_s25, %s47_s25 }
  0x2c   :  { %p274_p5 = scmp.ne.s32.totalorder %s47_s25, %s273_s0  ;;  %p279_p7 = scmp.lt.s32.totalorder %s273_s0, %s273_s0 }
  0x2e   :  { %p280_p8 = por %p279_p7, %p278_p6 }
  0x30   :  { %p281_p9 = pnand %p280_p8, %p274_p5 }
  0x32   :  { %284 = shalt.err (!%p281_p9)
}
  0x33   :  { %49 = dma.hbm_to_vmem [thread:$0]  %s456_s4, 128, %s47_s25, [#allocation6]  }
  0x34   :  { %s285_s16 = scalar_lea.hbm %s458_s6, 128 }
  0x35   :  { %p286_p10 = scmp.ne.s32.totalorder %s458_s6, %s285_s16  ;;  %p289_p11 = scmp.lt.u32.totalorder %s285_s16, %s458_s6 }
  0x37   :  { %p291_p12 = pnand %p289_p11, %p286_p10 }
  0x39   :  { %294 = shalt.err (!%p291_p12)
}
  0x3a   :  { %s295_s21 = scalar_lea.vmem %s59_s28, 128  ;;  %p300_p0 = scmp.lt.s32.totalorder %s59_s28, %s59_s28 }
  0x3b   :  { %p296_p13 = scmp.ne.s32.totalorder %s59_s28, %s295_s21  ;;  %p301_p1 = scmp.lt.s32.totalorder %s295_s21, %s295_s21 }
  0x3d   :  { %p302_p2 = por %p301_p1, %p300_p0 }
  0x3f   :  { %p303_p3 = pnand %p302_p2, %p296_p13 }
  0x41   :  { %306 = shalt.err (!%p303_p3)
}
  0x42   :  { %61 = dma.hbm_to_vmem [thread:$0]  %s458_s6, 128, %s59_s28, [#allocation9]  }
  0x43   :  { %329 = dma.done.wait [#allocation3], 32  }
  0x44   :  { %330 = vsyncadd [#allocation3], 4294967264 }
  0x45   :  { %331 = dma.done.wait [#allocation6], 160  }
  0x46   :  { %332 = vsyncadd [#allocation6], 4294967136 }
  0x47   :  { %333 = dma.done.wait [#allocation9], 128  }
  0x48   :  { %334 = vsyncadd [#allocation9], 4294967168  ;;  %v85_v0 = vlaneseq  ;;  %v74_v2 = vld [vmem:[#allocation2] sm:$0x3]  ;;  %v76_v3 = vld [vmem:[%s453_s1] sm:$0x3] }
  0x49   :  { %v78_v4 = vld [vmem:[#allocation5] sm:$0x3]  ;;  %v75_v5 = vunpack.c.0.s8 %v74_v2  ;;  %v77_v6 = vunpack.c.0.s8 %v76_v3  ;;  %v81_v8 = vld [vmem:[#allocation7] sm:$0xff]  ;;  %v84_v10 = vld [vmem:[#allocation8] sm:$0xff]  ;;  %v341_v14 = vmov 0.0   ;;  %vm180_vm7 = vcmask 1040384  }
  0x4a   :  { %v86_v1 = vshrl.u32 %v85_v0, 7  ;;  %v79_v7 = vunpack.c.0.s8 %v78_v4  ;;  %v82_v9 = vmul.f32 0.99, %v81_v8  ;;  %v80_v11 = vld [vmem:[%s455_s3] sm:$0xff]  ;;  %vm182_vm8 = vcmask 1041408  }
  0x4b   :  { %vm87_vm1 = vcmp.ne.s32.totalorder %v77_v6, 0  ;;  %vm92_vm3 = vcmp.eq.s32.totalorder %v75_v5, 2  ;;  %v83_v42 = vld [vmem:[%s457_s5] sm:$0xff]  ;;  %vm184_vm9 = vcmask 1042432   ;;  %vm186_vm10 = vcmask 1043456   ;;  %s342_s5 = smov [#allocation10]  }
  0x4c   :  { %vm90_vm0 = vcmp.gt.s32.totalorder %v86_v1, 0  ;;  %vm88_vm2 = vcmp.ne.s32.totalorder %v79_v7, 0  ;;  %v96_v12 = vmul.f32 %v84_v10, %v82_v9  ;;  %v106_v44 = vrot.slane %v83_v42, 7  ;;  %s201_s25 = sshll.u32 %s342_s5, 4  ;;  %s202_s25 = int_to_ptr.vmem [resolvable:$true] %s201_s25 }
  0x4d   :  { %vm89_vm4 = vmor %vm87_vm1, %vm88_vm2  ;;  %vm188_vm11 = vcmask 1044480   ;;  %vm190_vm12 = vcmask 1045504   ;;  %vm192_vm13 = vcmask 1046528   ;;  %s307_s26 = scalar_lea.vmem %s202_s25, 128  ;;  %p312_p5 = scmp.lt.s32.totalorder %s202_s25, %s202_s25 }
  0x4e   :  { %vm91_vm5 = vmand %vm89_vm4, %vm90_vm0  ;;  %v97_v13 = vadd.f32 %v96_v12, %v80_v11  ;;  %p308_p4 = scmp.ne.s32.totalorder %s202_s25, %s307_s26  ;;  %p313_p6 = scmp.lt.s32.totalorder %s307_s26, %s307_s26 }
  0x4f   :  { %vm93_vm6 = vmor %vm92_vm3, %vm91_vm5 }
  0x50   :  { %v212_v15 = vsel %vm93_vm6, 1.0, %v341_v14  ;;  %v101_v18 = vrot.slane %v97_v13, 1  ;;  %v108_v56 = vsub.f32 %v97_v13, %v106_v44  ;;  %p314_p7 = por %p313_p6, %p312_p5 }
  0x51   :  { %v98_v16 = vmul.f32 %v212_v15, %v84_v10  ;;  %v99_v17 = vsub.f32 1.0, %v212_v15 }
  0x52   :  { %v109_v0 = vmul.f32 %v108_v56, %v108_v56  ;;  %p315_p8 = pnand %p314_p7, %p308_p4 }
  0x53   :  { %v103_v19 = vmul.f32 %v101_v18, %v99_v17 }
  0x54   :  { %v178_v7 = vrot.slane %v109_v0, 1 }
  0x55   :  { %v104_v20 = vadd.f32 %v103_v19, %v98_v16 }
  0x57   :  { %v110_v21 = vmul.f32 %v104_v20, %v82_v9 }
  0x59   :  { %v111_v22 = vadd.f32 %v110_v21, %v80_v11 }
  0x5b   :  { %v113_v23 = vrot.slane %v111_v22, 1  ;;  %v117_v53 = vsub.f32 %v111_v22, %v106_v44 }
  0x5d   :  { %v115_v24 = vmul.f32 %v113_v23, %v99_v17  ;;  %v118_v61 = vmul.f32 %v117_v53, %v117_v53 }
  0x5f   :  { %v116_v25 = vadd.f32 %v115_v24, %v98_v16  ;;  %v175_v5 = vrot.slane %v118_v61, 1 }
  0x61   :  { %v119_v26 = vmul.f32 %v116_v25, %v82_v9 }
  0x63   :  { %v120_v27 = vadd.f32 %v119_v26, %v80_v11 }
  0x65   :  { %v122_v28 = vrot.slane %v120_v27, 1  ;;  %v126_v52 = vsub.f32 %v120_v27, %v106_v44 }
  0x67   :  { %v124_v29 = vmul.f32 %v122_v28, %v99_v17  ;;  %v127_v60 = vmul.f32 %v126_v52, %v126_v52 }
  0x69   :  { %v125_v30 = vadd.f32 %v124_v29, %v98_v16  ;;  %v172_v4 = vrot.slane %v127_v60, 1 }
  0x6b   :  { %v128_v31 = vmul.f32 %v125_v30, %v82_v9 }
  0x6d   :  { %v129_v32 = vadd.f32 %v128_v31, %v80_v11 }
  0x6f   :  { %v131_v33 = vrot.slane %v129_v32, 1  ;;  %v135_v50 = vsub.f32 %v129_v32, %v106_v44 }
  0x71   :  { %v133_v34 = vmul.f32 %v131_v33, %v99_v17  ;;  %v136_v58 = vmul.f32 %v135_v50, %v135_v50 }
  0x73   :  { %v134_v35 = vadd.f32 %v133_v34, %v98_v16  ;;  %v169_v3 = vrot.slane %v136_v58, 1 }
  0x75   :  { %v137_v36 = vmul.f32 %v134_v35, %v82_v9 }
  0x77   :  { %v138_v37 = vadd.f32 %v137_v36, %v80_v11 }
  0x79   :  { %v140_v38 = vrot.slane %v138_v37, 1  ;;  %v144_v49 = vsub.f32 %v138_v37, %v106_v44 }
  0x7b   :  { %v142_v39 = vmul.f32 %v140_v38, %v99_v17  ;;  %v145_v57 = vmul.f32 %v144_v49, %v144_v49 }
  0x7d   :  { %v143_v40 = vadd.f32 %v142_v39, %v98_v16  ;;  %v166_v1 = vrot.slane %v145_v57, 1 }
  0x7f   :  { %v146_v41 = vmul.f32 %v143_v40, %v82_v9 }
  0x81   :  { %v147_v43 = vadd.f32 %v146_v41, %v80_v11 }
  0x83   :  { %v149_v45 = vrot.slane %v147_v43, 1  ;;  %v153_v48 = vsub.f32 %v147_v43, %v106_v44 }
  0x85   :  { %v151_v46 = vmul.f32 %v149_v45, %v99_v17  ;;  %v154_v54 = vmul.f32 %v153_v48, %v153_v48 }
  0x87   :  { %v152_v47 = vadd.f32 %v151_v46, %v98_v16  ;;  %v163_v63 = vrot.slane %v154_v54, 1 }
  0x89   :  { %v155_v51 = vmul.f32 %v152_v47, %v82_v9 }
  0x8b   :  { %v156_v55 = vadd.f32 %v155_v51, %v80_v11 }
  0x8d   :  { %v157_v59 = vsub.f32 %v156_v55, %v106_v44 }
  0x8f   :  { %v158_v62 = vmul.f32 %v157_v59, %v157_v59 }
  0x91   :  { %v160_v2 = vrot.slane %v158_v62, 1 }
  0x93   :  { %v181_v6 = vsel %vm180_vm7, %v160_v2, %v163_v63 }
  0x94   :  { %v183_v8 = vsel %vm182_vm8, %v181_v6, %v166_v1 }
  0x95   :  { %v185_v9 = vsel %vm184_vm9, %v183_v8, %v169_v3 }
  0x96   :  { %v187_v10 = vsel %vm186_vm10, %v185_v9, %v172_v4 }
  0x97   :  { %v189_v11 = vsel %vm188_vm11, %v187_v10, %v175_v5 }
  0x98   :  { %v191_v12 = vsel %vm190_vm12, %v189_v11, %v178_v7 }
  0x99   :  { %v193_v13 = vsel %vm192_vm13, %v191_v12, 0.0 }
  0x9a   :  { %194 = vst [vmem:[#allocation10] sm:$0xff] %v193_v13 }
  0x9b   :  { %318 = shalt.err (!%p315_p8)
}
  0x9c   :  { %s319_s30 = scalar_lea.hbm %s459_s7, 128 }
  0x9d   :  { %p320_p9 = scmp.ne.s32.totalorder %s459_s7, %s319_s30  ;;  %p323_p10 = scmp.lt.u32.totalorder %s319_s30, %s459_s7 }
  0x9f   :  { %p325_p11 = pnand %p323_p10, %p320_p9 }
  0xa1   :  { %328 = shalt.err (!%p325_p11)
}
  0xa2   :  { %204 = dma.vmem_to_hbm [thread:$0]  %s202_s25, 128, %s459_s7, [#allocation4]  }
  0xa3   :  { %335 = dma.done.wait [#allocation4], 128  }
  0xa4   :  { %336 = vsyncadd [#allocation4], 4294967168 }
  0xa5   :  { %208 = vsyncpa [#allocation3], 1 }
  0xa6   :  { %209 = vsyncpa [#allocation6], 1 }
  0xa7   :  { %210 = vsyncpa [#allocation9], 1 }
  0xa8   :  { %211 = vsyncpa [#allocation4], 1 }

</bundles_post_ra>
